<compile_context>
chip_gen: v6e
topology: v6e:2x2x1
jax: 0.10.0
libtpu: 0.0.40
codegen_flags: <defaults>
</compile_context>

<pallas_src>
import functools

import jax
import jax.numpy as jnp
from jax.experimental import pallas as pl
from jax.experimental.pallas import tpu as pltpu


def _round_up(x: int, m: int) -> int:
    return ((x + m - 1) // m) * m


# -----------------------------------------------------------------------------
# Pallas kernel: fused 1x1-conv head (+ReLU, +sigmoid) and per-lane MSE partials
# -----------------------------------------------------------------------------
def _head_loss_kernel(*refs, n_feats, feat_channels, hw, tn):
    feat_refs = refs[:n_feats]                      # each (1, C_k, tn) bf16
    t_ref     = refs[n_feats]                       # (1, 1, tn) f32 target
    w1t_refs  = refs[n_feats + 1:2 * n_feats + 1]   # each (hidden, C_k) bf16
    b1_ref    = refs[2 * n_feats + 1]               # (hidden, 1) f32
    w2_ref    = refs[2 * n_feats + 2]               # (hidden, 1) f32
    b2_ref    = refs[2 * n_feats + 3]               # (1, 1) f32 in SMEM
    y_ref     = refs[2 * n_feats + 4]               # (1, 1, tn) f32 out (hm tile)
    sse_ref   = refs[2 * n_feats + 5]               # (1, 1, tn) f32 out (per-lane SSE partials)

    j = pl.program_id(1)

    @pl.when(j == 0)
    def _init():
        sse_ref[...] = jnp.zeros_like(sse_ref)

    # ---- layer 1: in-kernel "concat" via per-group partial matmuls (MXU, f32 acc) ----
    h = None
    for k in range(n_feats):
        xk = feat_refs[k][0]            # (C_k, tn) bf16
        wk = w1t_refs[k][...]           # (hidden, C_k) bf16
        if feat_channels[k] == 1:
            # Single-channel group: broadcast multiply on the VPU (f32) instead of a
            # degenerate K=1 MXU push; VPU slots have plenty of slack in this kernel.
            part = wk.astype(jnp.float32) * xk.astype(jnp.float32)       # (hidden, tn)
        else:
            part = jnp.dot(wk, xk, preferred_element_type=jnp.float32)   # (hidden, tn)
        h = part if h is None else h + part

    h = jnp.maximum(h + b1_ref[...], 0.0)            # bias (broadcast over lanes) + ReLU, f32

    # ---- layer 2 (hidden -> 1): VPU multiply + sublane (XLU) reduce, not an N=1 matmul ----
    logits = jnp.sum(h * w2_ref[...], axis=0, keepdims=True) + b2_ref[0, 0]   # (1, tn)
    y = jax.nn.sigmoid(logits)                       # EUP
    y_ref[...] = y[None].astype(y_ref.dtype)         # lane-dense store

    # ---- MSE pieces: per-lane squared error accumulated in the resident output block ----
    diff = y - t_ref[0]
    sq = diff * diff
    if hw % tn != 0:
        # Mask out-of-bounds tail lanes of the last pixel tile so they don't bias the loss.
        lane = jax.lax.broadcasted_iota(jnp.int32, (1, tn), 1)
        sq = jnp.where(j * tn + lane < hw, sq, 0.0)
    sse_ref[...] = sse_ref[...] + sq[None]


def fused_head_and_loss(feats, target, w1t_groups, b1, w2, b2, *, tn=None):
    """feats: list of [B, C_k, HW] bf16; target: [B, 1, HW] f32.

    Returns (hm [B, 1, HW] f32, sse_partials [B, 1, tn] f32 — sum and divide outside).
    """
    n_feats = len(feats)
    B, _, HW = feats[0].shape
    hidden = int(b1.shape[0])
    feat_channels = tuple(int(f.shape[1]) for f in feats)
    c_in = sum(feat_channels)

    if tn is None:
        # Big lane tiles amortize the ~0.35 us per-grid-step overhead; sweep 512-2048.
        tn = min(2048, _round_up(HW, 128))
    nj = pl.cdiv(HW, tn)

    kernel = functools.partial(_head_loss_kernel, n_feats=n_feats,
                               feat_channels=feat_channels, hw=HW, tn=tn)

    feat_specs = [pl.BlockSpec((1, c, tn), lambda b, j: (b, 0, j)) for c in feat_channels]
    w_specs = [pl.BlockSpec((hidden, c), lambda b, j: (0, 0)) for c in feat_channels]
    in_specs = (
        feat_specs
        + [pl.BlockSpec((1, 1, tn), lambda b, j: (b, 0, j))]               # target tile
        + w_specs                                                           # W1^T pieces (resident)
        + [pl.BlockSpec((hidden, 1), lambda b, j: (0, 0)),                  # b1
           pl.BlockSpec((hidden, 1), lambda b, j: (0, 0)),                  # w2
           pl.BlockSpec(memory_space=pltpu.MemorySpace.SMEM)]               # b2 scalar in SMEM
    )
    out_specs = [
        pl.BlockSpec((1, 1, tn), lambda b, j: (b, 0, j)),                   # hm tile (lane-dense)
        pl.BlockSpec((1, 1, tn), lambda b, j: (b, 0, 0)),                   # per-batch SSE partials
    ]

    M = B * HW
    cost = pl.CostEstimate(
        flops=2 * M * hidden * (c_in + 1) + 4 * M,
        transcendentals=M,                                                   # sigmoid
        bytes_accessed=M * (2 * c_in + 4 + 4) + B * tn * 4 + 4 * hidden * (c_in + 2),
    )

    y, sse = pl.pallas_call(
        kernel,
        out_shape=(
            jax.ShapeDtypeStruct((B, 1, HW), jnp.float32),
            jax.ShapeDtypeStruct((B, 1, tn), jnp.float32),
        ),
        grid_spec=pltpu.PrefetchScalarGridSpec(
            num_scalar_prefetch=0,
            grid=(B, nj),
            in_specs=in_specs,
            out_specs=out_specs,
        ),
        compiler_params=pltpu.CompilerParams(
            # Batch axis feeds both TensorCores on v7x; the pixel axis carries the
            # per-batch loss reduction so it must stay "arbitrary".
            dimension_semantics=("parallel", "arbitrary"),
        ),
        cost_estimate=cost,
    )(*feats, target, *w1t_groups, b1, w2, b2)
    return y, sse


# -----------------------------------------------------------------------------
# ModleWithLoss equivalent
# -----------------------------------------------------------------------------
class Opt:
    clip_len = 2  # uses pre_img_1/pre_hm_1 and pre_img_2/pre_hm_2


class ModleWithLossJAX:
    def __init__(self, opt, hidden=32, seed=0):
        self.opt = opt
        self.hidden = hidden
        # Channel groups in concat order: image(3), pre_img_1(3), pre_hm_1(1),
        # then (pre_img_k(3), pre_hm_k(1)) for k = 2..clip_len.
        self.group_channels = [3, 3, 1] + [3, 1] * (opt.clip_len - 1)
        self.c_in = sum(self.group_channels)
        key = jax.random.PRNGKey(seed)
        k1, k2, k3, k4 = jax.random.split(key, 4)
        w1 = jax.random.normal(k1, (self.c_in, hidden), jnp.float32) * 0.1
        self.b1 = jax.random.normal(k2, (hidden, 1), jnp.float32) * 0.01
        self.w2 = jax.random.normal(k3, (hidden, 1), jnp.float32) * 0.1
        self.b2 = jax.random.normal(k4, (1, 1), jnp.float32) * 0.01
        # Pre-split W1^T per channel group; weights stored bf16 for the MXU.
        w1t = jnp.transpose(w1)                      # (hidden, C_in)
        self.w1t_groups = []
        off = 0
        for c in self.group_channels:
            self.w1t_groups.append(w1t[:, off:off + c].astype(jnp.bfloat16))
            off += c

    def forward(self, batch):
        pre_img = batch['pre_img_1'] if 'pre_img_1' in batch else None
        pre_hm = batch['pre_hm_1'] if 'pre_hm_1' in batch else None
        addtional_pre_imgs = []
        addtional_pre_hms = []
        for i in range(1, self.opt.clip_len):
            addtional_pre_imgs.append(batch['pre_img_{}'.format(i + 1)])
            addtional_pre_hms.append(batch['pre_hm_{}'.format(i + 1)])

        image = batch['image']
        B, _, H, W = image.shape
        HW = H * W

        feats = [image, pre_img, pre_hm]
        for img_i, hm_i in zip(addtional_pre_imgs, addtional_pre_hms):
            feats += [img_i, hm_i]

        # NCHW -> [B, C, H*W] is a free reshape (pixels land on the lane axis); no
        # transposed/concatenated activation copy is materialized in HBM. bf16 halves the
        # dominant HBM read stream; accumulation inside the kernel stays f32.
        # TODO(synk): in a real input pipeline the activations would already arrive in bf16.
        feats = [f.reshape(B, -1, HW).astype(jnp.bfloat16) for f in feats]
        target = batch['hm'].reshape(B, 1, HW).astype(jnp.float32)

        hm_flat, sse_partials = fused_head_and_loss(
            feats, target, self.w1t_groups, self.b1, self.w2, self.b2)

        hm = hm_flat.reshape(B, 1, H, W)             # back to NCHW convention
        loss = jnp.sum(sse_partials) / jnp.float32(B * HW)

        outputs = [{'hm': hm}]
        loss_stats = {'tot': loss, 'hm': loss}
        return (outputs[-1], loss, loss_stats)


# -----------------------------------------------------------------------------
# Pure-JAX reference (mirrors the kernel's bf16 input rounding) for validation
# -----------------------------------------------------------------------------
def _reference(module, batch):
    feats = [batch['image'], batch['pre_img_1'], batch['pre_hm_1']]
    for i in range(2, module.opt.clip_len + 1):
        feats += [batch['pre_img_{}'.format(i)], batch['pre_hm_{}'.format(i)]]
    B, _, H, W = batch['image'].shape
    x = jnp.concatenate(
        [f.reshape(B, -1, H * W).astype(jnp.bfloat16).astype(jnp.float32) for f in feats],
        axis=1)                                                        # (B, C_in, HW)
    w1t = jnp.concatenate([g.astype(jnp.float32) for g in module.w1t_groups], axis=1)
    h = jnp.maximum(jnp.einsum('hc,bcm->bhm', w1t, x) + module.b1[None], 0.0)
    logits = jnp.einsum('h,bhm->bm', module.w2[:, 0], h) + module.b2[0, 0]
    y = jax.nn.sigmoid(logits).reshape(B, 1, H, W)
    loss = jnp.mean((y - batch['hm']) ** 2)
    return y, loss


if __name__ == "__main__":
    opt = Opt()
    module = ModleWithLossJAX(opt, hidden=32, seed=0)

    B, H, W = 2, 16, 16
    key = jax.random.PRNGKey(0)
    ks = jax.random.split(key, 6)
    batch = {
        'image':     jax.random.normal(ks[0], (B, 3, H, W), jnp.float32),
        'pre_img_1': jax.random.normal(ks[1], (B, 3, H, W), jnp.float32),
        'pre_hm_1':  jax.random.uniform(ks[2], (B, 1, H, W), jnp.float32),
        'pre_img_2': jax.random.normal(ks[3], (B, 3, H, W), jnp.float32),
        'pre_hm_2':  jax.random.uniform(ks[4], (B, 1, H, W), jnp.float32),
        'hm':        jax.random.uniform(ks[5], (B, 1, H, W), jnp.float32),
    }

    out, loss, loss_stats = module.forward(batch)
    jax.block_until_ready((out['hm'], loss))

    assert out['hm'].shape == (B, 1, H, W)
    assert loss.shape == ()
    assert bool(jnp.isfinite(loss))

    hm_ref, loss_ref = _reference(module, batch)
    assert float(jnp.max(jnp.abs(out['hm'] - hm_ref))) < 5e-3
    assert abs(float(loss) - float(loss_ref)) < 5e-3

    print("KERNEL_OK")
</pallas_src>

<mosaic_0001>
module attributes {stable_mosaic.version = 11 : i64} {
  func.func @_head_loss_kernel(%arg0: i32, %arg1: i32, %arg2: memref<1x3x256xbf16, #tpu.memory_space<vmem>>, %arg3: memref<1x3x256xbf16, #tpu.memory_space<vmem>>, %arg4: memref<1x1x256xbf16, #tpu.memory_space<vmem>>, %arg5: memref<1x3x256xbf16, #tpu.memory_space<vmem>>, %arg6: memref<1x1x256xbf16, #tpu.memory_space<vmem>>, %arg7: memref<1x1x256xf32, #tpu.memory_space<vmem>>, %arg8: memref<32x3xbf16, #tpu.memory_space<vmem>>, %arg9: memref<32x3xbf16, #tpu.memory_space<vmem>>, %arg10: memref<32x1xbf16, #tpu.memory_space<vmem>>, %arg11: memref<32x3xbf16, #tpu.memory_space<vmem>>, %arg12: memref<32x1xbf16, #tpu.memory_space<vmem>>, %arg13: memref<32x1xf32, #tpu.memory_space<vmem>>, %arg14: memref<32x1xf32, #tpu.memory_space<vmem>>, %arg15: memref<1x1xf32, #tpu.memory_space<smem>>, %arg16: memref<1x1x256xf32, #tpu.memory_space<vmem>>, %arg17: memref<1x1x256xf32, #tpu.memory_space<vmem>>) attributes {dimension_semantics = [#tpu.dimension_semantics<parallel>, #tpu.dimension_semantics<arbitrary>], iteration_bounds = array<i64: 2, 1>, scalar_prefetch = 0 : i64, scratch_operands = 0 : i64, tpu.core_type = #tpu.core_type<tc>, window_params = [{transform_indices = @transform_0, window_bounds = array<i64: 1, 3, 256>}, {transform_indices = @transform_1, window_bounds = array<i64: 1, 3, 256>}, {transform_indices = @transform_2, window_bounds = array<i64: 1, 1, 256>}, {transform_indices = @transform_3, window_bounds = array<i64: 1, 3, 256>}, {transform_indices = @transform_4, window_bounds = array<i64: 1, 1, 256>}, {transform_indices = @transform_5, window_bounds = array<i64: 1, 1, 256>}, {pipeline_mode = #tpu.pipeline_mode<synchronous>, transform_indices = @transform_6, window_bounds = array<i64: 32, 3>}, {pipeline_mode = #tpu.pipeline_mode<synchronous>, transform_indices = @transform_7, window_bounds = array<i64: 32, 3>}, {pipeline_mode = #tpu.pipeline_mode<synchronous>, transform_indices = @transform_8, window_bounds = array<i64: 32, 1>}, {pipeline_mode = #tpu.pipeline_mode<synchronous>, transform_indices = @transform_9, window_bounds = array<i64: 32, 3>}, {pipeline_mode = #tpu.pipeline_mode<synchronous>, transform_indices = @transform_10, window_bounds = array<i64: 32, 1>}, {pipeline_mode = #tpu.pipeline_mode<synchronous>, transform_indices = @transform_11, window_bounds = array<i64: 32, 1>}, {pipeline_mode = #tpu.pipeline_mode<synchronous>, transform_indices = @transform_12, window_bounds = array<i64: 32, 1>}, {transform_indices = @transform_13, window_bounds = array<i64: 1, 1>}, {transform_indices = @transform_14, window_bounds = array<i64: 1, 1, 256>}, {transform_indices = @transform_15, window_bounds = array<i64: 1, 1, 256>}]} {
    %c0_i32 = arith.constant 0 : i32
    %0 = arith.cmpi eq, %arg1, %c0_i32 : i32
    %1 = arith.extui %0 : i1 to i32
    %c0_i32_0 = arith.constant 0 : i32
    %2 = arith.cmpi ne, %1, %c0_i32_0 : i32
    scf.if %2 {
      %cst_48 = arith.constant 0.000000e+00 : f32
      %63 = vector.broadcast %cst_48 : f32 to vector<1x1x256xf32>
      %c0_49 = arith.constant 0 : index
      %c0_50 = arith.constant 0 : index
      %c0_51 = arith.constant 0 : index
      %64 = vector.load %arg17[%c0_49, %c0_50, %c0_51] : memref<1x1x256xf32, #tpu.memory_space<vmem>>, vector<1x1x256xf32>
      tpu.vector_store %arg17[%c0_49, %c0_50, %c0_51], %63 {strides = array<i32>} : memref<1x1x256xf32, #tpu.memory_space<vmem>>, vector<1x1x256xf32>,
    } else {
    }
    %c0 = arith.constant 0 : index
    %c0_1 = arith.constant 0 : index
    %c0_2 = arith.constant 0 : index
    %3 = vector.load %arg2[%c0, %c0_1, %c0_2] : memref<1x3x256xbf16, #tpu.memory_space<vmem>>, vector<1x3x256xbf16>
    %4 = vector.shape_cast %3 : vector<1x3x256xbf16> to vector<3x256xbf16>
    %c0_3 = arith.constant 0 : index
    %c0_4 = arith.constant 0 : index
    %5 = vector.load %arg8[%c0_3, %c0_4] : memref<32x3xbf16, #tpu.memory_space<vmem>>, vector<32x3xbf16>
    %cst = arith.constant dense<0.000000e+00> : vector<32x256xf32>
    %6 = tpu.matmul %5, %4, %cst {dimension_numbers = #tpu.dot_dimension_numbers<[1], [0], [0], [1], [0, 0, 1, 1], [], []>} : vector<32x3xbf16>, vector<3x256xbf16>, vector<32x256xf32> -> vector<32x256xf32>
    %c0_5 = arith.constant 0 : index
    %c0_6 = arith.constant 0 : index
    %c0_7 = arith.constant 0 : index
    %7 = vector.load %arg3[%c0_5, %c0_6, %c0_7] : memref<1x3x256xbf16, #tpu.memory_space<vmem>>, vector<1x3x256xbf16>
    %8 = vector.shape_cast %7 : vector<1x3x256xbf16> to vector<3x256xbf16>
    %c0_8 = arith.constant 0 : index
    %c0_9 = arith.constant 0 : index
    %9 = vector.load %arg9[%c0_8, %c0_9] : memref<32x3xbf16, #tpu.memory_space<vmem>>, vector<32x3xbf16>
    %cst_10 = arith.constant dense<0.000000e+00> : vector<32x256xf32>
    %10 = tpu.matmul %9, %8, %cst_10 {dimension_numbers = #tpu.dot_dimension_numbers<[1], [0], [0], [1], [0, 0, 1, 1], [], []>} : vector<32x3xbf16>, vector<3x256xbf16>, vector<32x256xf32> -> vector<32x256xf32>
    %11 = arith.addf %6, %10 : vector<32x256xf32>
    %c0_11 = arith.constant 0 : index
    %c0_12 = arith.constant 0 : index
    %c0_13 = arith.constant 0 : index
    %12 = vector.load %arg4[%c0_11, %c0_12, %c0_13] : memref<1x1x256xbf16, #tpu.memory_space<vmem>>, vector<1x1x256xbf16>
    %13 = vector.shape_cast %12 : vector<1x1x256xbf16> to vector<1x256xbf16>
    %c0_14 = arith.constant 0 : index
    %c0_15 = arith.constant 0 : index
    %14 = vector.load %arg10[%c0_14, %c0_15] : memref<32x1xbf16, #tpu.memory_space<vmem>>, vector<32x1xbf16>
    %15 = arith.extf %14 : vector<32x1xbf16> to vector<32x1xf32>
    %16 = arith.extf %13 : vector<1x256xbf16> to vector<1x256xf32>
    %17 = vector.broadcast %15 : vector<32x1xf32> to vector<32x256xf32>
    %18 = vector.broadcast %16 : vector<1x256xf32> to vector<32x256xf32>
    %19 = arith.mulf %17, %18 : vector<32x256xf32>
    %20 = arith.addf %11, %19 : vector<32x256xf32>
    %c0_16 = arith.constant 0 : index
    %c0_17 = arith.constant 0 : index
    %c0_18 = arith.constant 0 : index
    %21 = vector.load %arg5[%c0_16, %c0_17, %c0_18] : memref<1x3x256xbf16, #tpu.memory_space<vmem>>, vector<1x3x256xbf16>
    %22 = vector.shape_cast %21 : vector<1x3x256xbf16> to vector<3x256xbf16>
    %c0_19 = arith.constant 0 : index
    %c0_20 = arith.constant 0 : index
    %23 = vector.load %arg11[%c0_19, %c0_20] : memref<32x3xbf16, #tpu.memory_space<vmem>>, vector<32x3xbf16>
    %cst_21 = arith.constant dense<0.000000e+00> : vector<32x256xf32>
    %24 = tpu.matmul %23, %22, %cst_21 {dimension_numbers = #tpu.dot_dimension_numbers<[1], [0], [0], [1], [0, 0, 1, 1], [], []>} : vector<32x3xbf16>, vector<3x256xbf16>, vector<32x256xf32> -> vector<32x256xf32>
    %25 = arith.addf %20, %24 : vector<32x256xf32>
    %c0_22 = arith.constant 0 : index
    %c0_23 = arith.constant 0 : index
    %c0_24 = arith.constant 0 : index
    %26 = vector.load %arg6[%c0_22, %c0_23, %c0_24] : memref<1x1x256xbf16, #tpu.memory_space<vmem>>, vector<1x1x256xbf16>
    %27 = vector.shape_cast %26 : vector<1x1x256xbf16> to vector<1x256xbf16>
    %c0_25 = arith.constant 0 : index
    %c0_26 = arith.constant 0 : index
    %28 = vector.load %arg12[%c0_25, %c0_26] : memref<32x1xbf16, #tpu.memory_space<vmem>>, vector<32x1xbf16>
    %29 = arith.extf %28 : vector<32x1xbf16> to vector<32x1xf32>
    %30 = arith.extf %27 : vector<1x256xbf16> to vector<1x256xf32>
    %31 = vector.broadcast %29 : vector<32x1xf32> to vector<32x256xf32>
    %32 = vector.broadcast %30 : vector<1x256xf32> to vector<32x256xf32>
    %33 = arith.mulf %31, %32 : vector<32x256xf32>
    %34 = arith.addf %25, %33 : vector<32x256xf32>
    %c0_27 = arith.constant 0 : index
    %c0_28 = arith.constant 0 : index
    %35 = vector.load %arg13[%c0_27, %c0_28] : memref<32x1xf32, #tpu.memory_space<vmem>>, vector<32x1xf32>
    %36 = vector.broadcast %35 : vector<32x1xf32> to vector<32x256xf32>
    %37 = arith.addf %34, %36 : vector<32x256xf32>
    %cst_29 = arith.constant 0.000000e+00 : f32
    %38 = vector.broadcast %cst_29 : f32 to vector<32x256xf32>
    %39 = arith.maximumf %37, %38 : vector<32x256xf32>
    %c0_30 = arith.constant 0 : index
    %c0_31 = arith.constant 0 : index
    %40 = vector.load %arg14[%c0_30, %c0_31] : memref<32x1xf32, #tpu.memory_space<vmem>>, vector<32x1xf32>
    %41 = vector.broadcast %40 : vector<32x1xf32> to vector<32x256xf32>
    %42 = arith.mulf %39, %41 : vector<32x256xf32>
    %cst_32 = arith.constant dense<0.000000e+00> : vector<256xf32>
    %43 = vector.multi_reduction <add>, %42, %cst_32 [0] : vector<32x256xf32> to vector<256xf32>
    %44 = vector.shape_cast %43 : vector<256xf32> to vector<1x256xf32>
    %c0_33 = arith.constant 0 : index
    %c0_34 = arith.constant 0 : index
    %45 = memref.load %arg15[%c0_33, %c0_34] : memref<1x1xf32, #tpu.memory_space<smem>>
    %46 = vector.broadcast %45 : f32 to vector<1x256xf32>
    %47 = arith.addf %44, %46 : vector<1x256xf32>
    %48 = arith.negf %47 : vector<1x256xf32>
    %49 = math.exp %48 : vector<1x256xf32>
    %cst_35 = arith.constant 1.000000e+00 : f32
    %50 = vector.broadcast %cst_35 : f32 to vector<1x256xf32>
    %51 = arith.addf %50, %49 : vector<1x256xf32>
    %52 = arith.divf %50, %51 : vector<1x256xf32>
    %53 = vector.shape_cast %52 : vector<1x256xf32> to vector<1x1x256xf32>
    %c0_36 = arith.constant 0 : index
    %c0_37 = arith.constant 0 : index
    %c0_38 = arith.constant 0 : index
    %54 = vector.load %arg16[%c0_36, %c0_37, %c0_38] : memref<1x1x256xf32, #tpu.memory_space<vmem>>, vector<1x1x256xf32>
    tpu.vector_store %arg16[%c0_36, %c0_37, %c0_38], %53 {strides = array<i32>} : memref<1x1x256xf32, #tpu.memory_space<vmem>>, vector<1x1x256xf32>,
    %c0_39 = arith.constant 0 : index
    %c0_40 = arith.constant 0 : index
    %c0_41 = arith.constant 0 : index
    %55 = vector.load %arg7[%c0_39, %c0_40, %c0_41] : memref<1x1x256xf32, #tpu.memory_space<vmem>>, vector<1x1x256xf32>
    %56 = vector.shape_cast %55 : vector<1x1x256xf32> to vector<1x256xf32>
    %57 = arith.subf %52, %56 : vector<1x256xf32>
    %58 = arith.mulf %57, %57 : vector<1x256xf32>
    %c0_42 = arith.constant 0 : index
    %c0_43 = arith.constant 0 : index
    %c0_44 = arith.constant 0 : index
    %59 = vector.load %arg17[%c0_42, %c0_43, %c0_44] : memref<1x1x256xf32, #tpu.memory_space<vmem>>, vector<1x1x256xf32>
    %60 = vector.shape_cast %58 : vector<1x256xf32> to vector<1x1x256xf32>
    %61 = arith.addf %59, %60 : vector<1x1x256xf32>
    %c0_45 = arith.constant 0 : index
    %c0_46 = arith.constant 0 : index
    %c0_47 = arith.constant 0 : index
    %62 = vector.load %arg17[%c0_45, %c0_46, %c0_47] : memref<1x1x256xf32, #tpu.memory_space<vmem>>, vector<1x1x256xf32>
    tpu.vector_store %arg17[%c0_45, %c0_46, %c0_47], %61 {strides = array<i32>} : memref<1x1x256xf32, #tpu.memory_space<vmem>>, vector<1x1x256xf32>,
    return
  }
  func.func @transform_0(%arg0: i32, %arg1: i32) -> (i32, i32, i32) {
    %c0_i32 = arith.constant 0 : i32
    %c0_i32_0 = arith.constant 0 : i32
    return %arg0, %c0_i32, %arg1 : i32, i32, i32
  }
  func.func @transform_1(%arg0: i32, %arg1: i32) -> (i32, i32, i32) {
    %c0_i32 = arith.constant 0 : i32
    %c0_i32_0 = arith.constant 0 : i32
    return %arg0, %c0_i32, %arg1 : i32, i32, i32
  }
  func.func @transform_2(%arg0: i32, %arg1: i32) -> (i32, i32, i32) {
    %c0_i32 = arith.constant 0 : i32
    %c0_i32_0 = arith.constant 0 : i32
    return %arg0, %c0_i32, %arg1 : i32, i32, i32
  }
  func.func @transform_3(%arg0: i32, %arg1: i32) -> (i32, i32, i32) {
    %c0_i32 = arith.constant 0 : i32
    %c0_i32_0 = arith.constant 0 : i32
    return %arg0, %c0_i32, %arg1 : i32, i32, i32
  }
  func.func @transform_4(%arg0: i32, %arg1: i32) -> (i32, i32, i32) {
    %c0_i32 = arith.constant 0 : i32
    %c0_i32_0 = arith.constant 0 : i32
    return %arg0, %c0_i32, %arg1 : i32, i32, i32
  }
  func.func @transform_5(%arg0: i32, %arg1: i32) -> (i32, i32, i32) {
    %c0_i32 = arith.constant 0 : i32
    %c0_i32_0 = arith.constant 0 : i32
    return %arg0, %c0_i32, %arg1 : i32, i32, i32
  }
  func.func @transform_6(%arg0: i32, %arg1: i32) -> (i32, i32) {
    %c0_i32 = arith.constant 0 : i32
    %c0_i32_0 = arith.constant 0 : i32
    %c0_i32_1 = arith.constant 0 : i32
    return %c0_i32, %c0_i32_0 : i32, i32
  }
  func.func @transform_7(%arg0: i32, %arg1: i32) -> (i32, i32) {
    %c0_i32 = arith.constant 0 : i32
    %c0_i32_0 = arith.constant 0 : i32
    %c0_i32_1 = arith.constant 0 : i32
    return %c0_i32, %c0_i32_0 : i32, i32
  }
  func.func @transform_8(%arg0: i32, %arg1: i32) -> (i32, i32) {
    %c0_i32 = arith.constant 0 : i32
    %c0_i32_0 = arith.constant 0 : i32
    %c0_i32_1 = arith.constant 0 : i32
    return %c0_i32, %c0_i32_0 : i32, i32
  }
  func.func @transform_9(%arg0: i32, %arg1: i32) -> (i32, i32) {
    %c0_i32 = arith.constant 0 : i32
    %c0_i32_0 = arith.constant 0 : i32
    %c0_i32_1 = arith.constant 0 : i32
    return %c0_i32, %c0_i32_0 : i32, i32
  }
  func.func @transform_10(%arg0: i32, %arg1: i32) -> (i32, i32) {
    %c0_i32 = arith.constant 0 : i32
    %c0_i32_0 = arith.constant 0 : i32
    %c0_i32_1 = arith.constant 0 : i32
    return %c0_i32, %c0_i32_0 : i32, i32
  }
  func.func @transform_11(%arg0: i32, %arg1: i32) -> (i32, i32) {
    %c0_i32 = arith.constant 0 : i32
    %c0_i32_0 = arith.constant 0 : i32
    %c0_i32_1 = arith.constant 0 : i32
    return %c0_i32, %c0_i32_0 : i32, i32
  }
  func.func @transform_12(%arg0: i32, %arg1: i32) -> (i32, i32) {
    %c0_i32 = arith.constant 0 : i32
    %c0_i32_0 = arith.constant 0 : i32
    %c0_i32_1 = arith.constant 0 : i32
    return %c0_i32, %c0_i32_0 : i32, i32
  }
  func.func @transform_13(%arg0: i32, %arg1: i32) -> (i32, i32) {
    %c0_i32 = arith.constant 0 : i32
    %c0_i32_0 = arith.constant 0 : i32
    %c0_i32_1 = arith.constant 0 : i32
    return %c0_i32, %c0_i32_0 : i32, i32
  }
  func.func @transform_14(%arg0: i32, %arg1: i32) -> (i32, i32, i32) {
    %c0_i32 = arith.constant 0 : i32
    %c0_i32_0 = arith.constant 0 : i32
    return %arg0, %c0_i32, %arg1 : i32, i32, i32
  }
  func.func @transform_15(%arg0: i32, %arg1: i32) -> (i32, i32, i32) {
    %c0_i32 = arith.constant 0 : i32
    %c0_i32_0 = arith.constant 0 : i32
    %c0_i32_1 = arith.constant 0 : i32
    return %arg0, %c0_i32, %c0_i32_0 : i32, i32, i32
  }
}

</mosaic_0001>

<bundles_post_ra>
// kernel: tpu_custom_call.1
= control target key start
LH: loop header
LB: loop body
LE: loop exit
PB: predicated region body
PF: predicated region fallthrough
CT: control target
= control target key end

     0   :  { %s2175_s0 = inlined_call_operand.vmem [shape: bf16[2,3,256], index: 0, kind: input, shape index: {}]   ;;  %s2176_s1 = inlined_call_operand.vmem [shape: bf16[2,3,256], index: 1, kind: input, shape index: {}]   ;;  %s2177_s2 = inlined_call_operand.vmem [shape: bf16[2,1,256], index: 2, kind: input, shape index: {}]   ;;  %s2178_s3 = inlined_call_operand.vmem [shape: bf16[2,3,256], index: 3, kind: input, shape index: {}]   ;;  %s2179_s4 = inlined_call_operand.vmem [shape: bf16[2,1,256], index: 4, kind: input, shape index: {}]   ;;  %s2180_s5 = inlined_call_operand.vmem [shape: f32[2,1,256], index: 5, kind: input, shape index: {}]   ;;  %s2181_s6 = inlined_call_operand.vmem [shape: bf16[32,3], index: 6, kind: input, shape index: {}]   ;;  %s2182_s7 = inlined_call_operand.vmem [shape: bf16[32,3], index: 7, kind: input, shape index: {}]   ;;  %s2183_s8 = inlined_call_operand.vmem [shape: bf16[32,1], index: 8, kind: input, shape index: {}]   ;;  %s2184_s9 = inlined_call_operand.vmem [shape: bf16[32,3], index: 9, kind: input, shape index: {}]   ;;  %s2185_s10 = inlined_call_operand.vmem [shape: bf16[32,1], index: 10, kind: input, shape index: {}]   ;;  %s2186_s11 = inlined_call_operand.vmem [shape: f32[32,1], index: 11, kind: input, shape index: {}]   ;;  %s2187_s12 = inlined_call_operand.vmem [shape: f32[32,1], index: 12, kind: input, shape index: {}]   ;;  %s2188_s13 = inlined_call_operand.<no memory space> [shape: f32[1,1], index: 13, kind: input, shape index: {}]   ;;  %s2189_s14 = inlined_call_operand.hbm [shape: f32[2,1,256], index: 14, kind: output, shape index: {0}]   ;;  %s2190_s15 = inlined_call_operand.hbm [shape: f32[2,1,256], index: 15, kind: output, shape index: {1}]  }
   0x1   :  { %2196 = sst [smem:[#allocation14_spill]] %s2175_s0 }
   0x2   :  { %2197 = sst [smem:[#allocation15_spill]] %s2176_s1 }
   0x3   :  { %2198 = sst [smem:[#allocation16_spill]] %s2177_s2 }
   0x4   :  { %21 = sst [smem:[#allocation2]] %s2188_s13 }
   0x5   :  { %22 = vsyncpa [#allocation4], 0 }
   0x6   :  { %24 = vsyncpa [#allocation4 + $0x1], 0 }
   0x7   :  { %25 = vsyncpa [#allocation6], 0 }
   0x8   :  { %27 = vsyncpa [#allocation6 + $0x1], 0  ;;  %s1881_s20 = smov 0   ;;  %s1883_s21 = smov 0  }
   0x9   :  { %s1885_s22 = smov 0   ;;  %s1887_s23 = smov 0  }
   0xa   :  { %s1889_s24 = smov 0   ;;  %s1891_s25 = smov 0  }
   0xb LB: > { %2199 = sst [smem:[#allocation9_spill]] %s1778_s22  ;;  %s1518_s13 = sadd.s32 4294967295, %s1790_s25   ;;  %s1790_s25 = sphi %s1891_s25, %s33_s25   ;;  %s1786_s24 = sphi %s1889_s24, %s2217_s24   ;;  %s1782_s23 = sphi %s1887_s23, %s2216_s23   ;;  %s1778_s22 = sphi %s1885_s22, %s2215_s22   ;;  %s1774_s21 = sphi %s1883_s21, %s2219_s21   ;;  %s1770_s20 = sphi %s1881_s20, %s2218_s20  }
   0xc   : > { %2200 = sst [smem:[#allocation10_spill]] %s1786_s24  ;;  %s1519_s26 = sadd.s32 4294967294, %s1790_s25  }
   0xd   : > { %s45_s27 = sadd.s32 1, %s1786_s24  ;;  %s390_s28 = sadd.s32 1, %s1778_s22 }
   0xe   : > { %p47_p0 = scmp.ge.s32.totalorder %s45_s27, 2  ;;  %p400_p1 = scmp.ne.s32.totalorder %s1778_s22, %s1774_s21 }
   0xf   : > { %p401_p2 = scmp.eq.s32.totalorder %s1518_s13, 1  ;;  %p406_p3 = scmp.ne.s32.totalorder %s1774_s21, %s1770_s20 }
  0x10   : > { %s2221_s27 = smov (%p47_p0, %s45_s27), 0  ;;  %p407_p5 = scmp.eq.s32.totalorder %s1519_s26, 1 }
  0x11   : > { %2201 = sst [smem:[#allocation11_spill]] %s2221_s27  ;;  %p1921_p4 = por %p401_p2, %p400_p1 }
  0x12   : > { %s385_s30 = ssub.s32 %s1786_s24, %s2221_s27  ;;  %p1522_p6 = scmp.ge.s32.totalorder %s1790_s25, 1 }
  0x13   : > { %p388_p7 = scmp.eq.s32.totalorder %s385_s30, 0  ;;  %p1928_p8 = por %p407_p5, %p406_p3 }
  0x14   : > { %p550_p9 = scmp.lt.s32.totalorder %s1790_s25, 3 }
  0x15   : > { %s2203_s16 = scalar_select %p1928_p8, 1, 0 }
  0x16   : > { %s1934_s17 = scalar_select %p388_p7, %s1778_s22, %s390_s28  }
  0x17   : > { %2204 = sst [smem:[#allocation12_spill]] %s2203_s16  ;;  %p551_p10 = pnand %p1522_p6, %p550_p9 }
  0x18   : > { %2205 = sst [smem:[#allocation13_spill]] %s1934_s17  ;;  %p650_p11 = scmp.lt.s32.totalorder (!%p551_p10), %s1782_s23, 1 }
  0x19   : > { %554 = sbr.rel (%p551_p10) target bundleno = 362 (0x16a), region = 76  ;;  %s2206_s1 = sld [smem:[#allocation15_spill]] (!%p551_p10) }
  0x1a   : > { %s2207_s0 = sld [smem:[#allocation14_spill]] (!%p551_p10)  ;;  %s2032_s16 = sand.u32 (!%p551_p10), 1, %s1774_s21  }
  0x1b   : > { %s2210_s2 = sld [smem:[#allocation16_spill]] (!%p551_p10)  ;;  %s2195_s27 = sshll.u32 (!%p551_p10), %s1782_s23, 5 }
  0x1c   : > { %s2101_s26 = scalar_lea.hbm (!%p551_p10), %s2189_s14, %s2195_s27 }
  0x1e   : > { %v712_v0 = vlaneseq  ;;  %vm753_vm0 = vcmask 1040384   ;;  %s651_s18 = scalar_select %p650_p11, %s1782_s23, 1  ;;  %vm754_vm1 = vcmask 1041408   ;;  %v1792_v1 = vmov 65535   ;;  %v1670_v14 = vld [vmem:[%s2182_s7] sm:$0xff]   ;;  %v1671_v20 = vld [vmem:[%s2182_s7 + $0x8] sm:$0xff]  }
  0x1f   : > { %v755_v2 = vsel %vm753_vm0, 4294967295, %v1792_v1  ;;  %v1793_v4 = vmov 0   ;;  %vm746_vm2 = vcmask 23552   ;;  %v1565_v18 = vld [vmem:[%s2183_s8] sm:$0xff]   ;;  %v1580_v25 = vld [vmem:[%s2183_s8 + $0x8] sm:$0xff]   ;;  %v1129_v45 = vld [vmem:[%s2186_s11 + $0x10] sm:$0xff] }
  0x20   : > { %v1939_v3 = vshrl.u32 %v712_v0, 7  ;;  %795 = vmatprep.mubr.bf16.mxu0 %v1793_v4  ;;  %805 = vmatprep.mubr.bf16.mxu1 %v1793_v4  ;;  %s1559_s19 = sshll.u32 %s651_s18, 2  ;;  %s1948_s30 = sshll.u32 %s651_s18, 1  ;;  %v756_v5 = vsel %vm754_vm1, %v755_v2, 0  ;;  %v1573_v19 = vld [vmem:[%s2185_s10] sm:$0xff]   ;;  %v1566_v22 = vunpack.c.l.bf16 %v1565_v18  ;;  %v1567_v23 = vunpack.c.h.bf16 %v1565_v18  ;;  %v1581_v26 = vld [vmem:[%s2185_s10 + $0x8] sm:$0xff]  }
  0x21   : > { %1648 = vset.pattern.permute.xlu0 %v1793_v4  ;;  %1659 = vset.pattern.permute.xlu1 %v1793_v4  ;;  %s667_s28 = scalar_lea.vmem %s2206_s1, %s1559_s19  ;;  %s704_s17 = scalar_lea.vmem %s2180_s5, %s1948_s30  ;;  %v1574_v24 = vunpack.c.l.bf16 %v1573_v19  ;;  %v1575_v30 = vunpack.c.h.bf16 %v1573_v19  ;;  %v1570_v31 = vunpack.c.l.bf16 %v1580_v25  ;;  %v1571_v32 = vunpack.c.h.bf16 %v1580_v25  ;;  %v1672_v39 = vld [vmem:[%s2181_s6] sm:$0xff]   ;;  %v1128_v42 = vld [vmem:[%s2186_s11 + $0x8] sm:$0xff]  ;;  %v1130_v46 = vld [vmem:[%s2186_s11 + $0x18] sm:$0xff] }
  0x22   : > { %v1536_v6 = vld.sshfl [vmem:[%s667_s28] sm:$0x33 pattern:$0x76325410]  ;;  %v1955_v7 = vsub.s32 0, %v1939_v3  ;;  %s657_s13 = scalar_lea.vmem %s2207_s0, %s1559_s19  ;;  %s686_s1 = scalar_lea.vmem %s2178_s3, %s1559_s19  ;;  %v1649_v33 = vpack.i.bf16 %v1567_v23, %v1566_v22  ;;  %v1578_v35 = vunpack.c.l.bf16 %v1581_v26  ;;  %v1579_v36 = vunpack.c.h.bf16 %v1581_v26  ;;  %v1674_v43 = vld [vmem:[%s2181_s6 + $0x8] sm:$0xff]  }
  0x23   : > { %v745_v8 = vcombine.high %v1536_v6, %v1536_v6  ;;  %v1957_v9 = vld [vmem:[%s704_s17] sm:$0x3]  ;;  %v758_v11 = vand.u32 %v1536_v6, %v756_v5  ;;  %v1660_v34 = vpack.i.bf16 %v1575_v30, %v1574_v24  ;;  %v1654_v37 = vpack.i.bf16 %v1571_v32, %v1570_v31  ;;  %v1675_v44 = vld [vmem:[%s2184_s9 + $0x8] sm:$0xff]   ;;  %v1169_v49 = vld [vmem:[%s2187_s12 + $0x10] sm:$0xff]  ;;  %s1523_s17 = sshll.u32 %s2032_s16, 1  ;;  %s695_s24 = scalar_lea.vmem %s2179_s4, %s1948_s30 }
  0x24   : > { %v1261_v10 = vrot.slane %v1957_v9, %v1955_v7  ;;  %v1541_v12 = vld.sshfl [vmem:[%s657_s13] sm:$0x33 pattern:$0x76325410]  ;;  %1650 = vperm.xlu0 %1648, %v1649_v33   ;;  %v1665_v38 = vpack.i.bf16 %v1579_v36, %v1578_v35  ;;  %v1168_v48 = vld [vmem:[%s2187_s12 + $0x8] sm:$0xff]  ;;  %v1170_v50 = vld [vmem:[%s2187_s12 + $0x18] sm:$0xff] }
  0x25   : > { %v761_v13 = vand.u32 %v756_v5, %v745_v8  ;;  %v834_v15 = vcombine.high %v1541_v12, %v1541_v12  ;;  %v1546_v16 = vld.sshfl [vmem:[%s686_s1] sm:$0x33 pattern:$0x76325410]  ;;  %v842_v27 = vand.u32 %v1541_v12, %v756_v5  ;;  %1661 = vperm.xlu1 %1659, %v1660_v34   ;;  %vm2035_vm3 = vcmp.lt.s32.totalorder %v712_v0, 256  ;;  %s2042_s19 = scalar_lea.vmem [#allocation5], %s1523_s17  ;;  %s676_s1 = scalar_lea.vmem %s2210_s2, %s1948_s30 }
  0x26   : > { %v988_v17 = vcombine.high %v1546_v16, %v1546_v16  ;;  %v996_v29 = vand.u32 %v1546_v16, %v756_v5  ;;  %v1673_v40 = vld [vmem:[%s2184_s9] sm:$0xff]   ;;  %v1794_v52 = vmov 0.0   ;;  %v937_v55 = vsub.s32 2, %v1939_v3  ;;  %s1217_s30 = sld [smem:[#allocation2]]  ;;  %s641_s22 = scalar_lea.vmem [#allocation3], %s1523_s17 }
  0x27   : > { %777 = vmatprep.subr.bf16.mxu0 %v761_v13  ;;  %1582 = vmatprep.subr.bf16.mxu1 %v761_v13  ;;  %v845_v21 = vand.u32 %v834_v15, %v756_v5  ;;  %v1127_v41 = vld [vmem:[%s2186_s11] sm:$0xff]  ;;  %716 = vst.msk [vmem:[%s2042_s19] sm:$0x3] %vm2035_vm3, %v1794_v52  ;;  %s1315_s28 = sshll.u32 %s641_s22, 4  ;;  %s1294_s18 = scalar_lea.sflag [#allocation4], %s2032_s16  ;;  %s2103_s28 = int_to_ptr.vmem [resolvable:$true] %s1315_s28 }
  0x28   : > { %778 = vmatpush1.bf16.msra.mxu0 %v758_v11  ;;  %1583 = vmatpush1.bf16.msra.mxu1 %v758_v11  ;;  %v999_v28 = vand.u32 %v988_v17, %v756_v5  ;;  %v1167_v47 = vld [vmem:[%s2187_s12] sm:$0xff] }
  0x29   : > { %861 = vmatprep.subr.bf16.mxu1 %v845_v21  ;;  %1655 = vperm.xlu0 %1648, %v1654_v37   ;;  %v900_v53 = vld [vmem:[%s676_s1] sm:$0x3] }
  0x2a   : > { %1015 = vmatprep.subr.bf16.mxu0 %v999_v28  ;;  %1666 = vperm.xlu1 %1659, %v1665_v38   ;;  %v909_v54 = vunpack.c.l.bf16 %v900_v53  ;;  %v1062_v56 = vld [vmem:[%s695_s24] sm:$0x3]  ;;  %s1684_s24 = scalar_lea.vmem %s2103_s28, 32 }
  0x2b   : > { %1537 = vmatmul.mubr.msk.bf16.vlgmr.msra.gmra.mxu0 %vm746_vm2, %v1670_v14  ;;  %1538 = vmatmul.mubr.msk.bf16.vlgmr.msra.gmra.mxu1 %vm746_vm2, %v1671_v20  ;;  %v1071_v62 = vunpack.c.l.bf16 %v1062_v56  ;;  %p1685_p12 = scmp.ne.s32.totalorder %s2103_s28, %s1684_s24 }
  0x2c   : > { %862 = vmatpush1.bf16.msra.mxu1 %v842_v27  ;;  %1016 = vmatpush1.bf16.msra.mxu0 %v996_v29  ;;  %v934_v58 = vrot.slane %v909_v54, %v1955_v7  ;;  %v938_v61 = vrot.slane %v909_v54, %v937_v55 }
  0x2d   : > { %879 = vmatprep.mubr.bf16.mxu1 %v1793_v4  ;;  %1033 = vmatprep.mubr.bf16.mxu0 %v1793_v4  ;;  %v1096_v12 = vrot.slane %v1071_v62, %v1955_v7  ;;  %v1100_v13 = vrot.slane %v1071_v62, %v937_v55  ;;  %p1686_p13 = pnand %p1685_p12, %p1921_p4 }
  0x2e   : > { %1133 = vperm.xlu0 %1648, %v1127_v41   ;;  %1138 = vperm.xlu1 %1659, %v1128_v42   ;;  %v944_v2 = vrot.slane %v934_v58, %v1955_v7  ;;  %v948_v8 = vrot.slane %v938_v61, %v1955_v7 }
  0x2f   : > { %v2069_v24 = vrot.slane %v1096_v12, %v1955_v7  ;;  %v2072_v25 = vrot.slane %v1100_v13, %v1955_v7  ;;  %p1687_p0 = pneg %p1686_p13 }
  0x32   : > { %1143 = vperm.xlu0 %1648, %v1129_v45   ;;  %1148 = vperm.xlu1 %1659, %v1130_v46  }
  0x33   : > { %1542 = vmatmul.mubr.msk.bf16.vlgmr.msra.gmra.mxu1 %vm746_vm2, %v1672_v39  ;;  %1547 = vmatmul.mubr.msk.bf16.vlgmr.msra.gmra.mxu0 %vm746_vm2, %v1673_v40 }
  0x34   : > { %889 = vmatprep.mubr.bf16.mxu1 %v1793_v4  ;;  %1043 = vmatprep.mubr.bf16.mxu0 %v1793_v4 }
  0x36   : > { %1173 = vperm.xlu0 %1648, %v1167_v47   ;;  %1178 = vperm.xlu1 %1659, %v1168_v48  }
  0x3a   : > { %1183 = vperm.xlu0 %1648, %v1169_v49   ;;  %1188 = vperm.xlu1 %1659, %v1170_v50  }
  0x3b   : > { %1543 = vmatmul.mubr.msk.bf16.gmra.mxu1 %vm746_vm2, %v1674_v43  ;;  %1548 = vmatmul.mubr.msk.bf16.gmra.mxu0 %vm746_vm2, %v1675_v44 }
  0x9f   : > { %v1651_v57 = vpop.permute.xlu0 %1650 }
  0xa0   : > { %v1652_v1 = vunpack.i.l.bf16 %v1651_v57  ;;  %v1662_v4 = vpop.permute.xlu1 %1661  ;;  %v1653_v16 = vunpack.i.h.bf16 %v1651_v57 }
  0xa1   : > { %v1663_v23 = vunpack.i.l.bf16 %v1662_v4  ;;  %v1664_v29 = vunpack.i.h.bf16 %v1662_v4 }
  0xa2   : > { %v949_v17 = vmul.f32 %v1652_v1, %v944_v2  ;;  %v950_v20 = vmul.f32 %v1652_v1, %v948_v8  ;;  %v951_v28 = vmul.f32 %v1653_v16, %v944_v2  ;;  %v952_v35 = vmul.f32 %v1653_v16, %v948_v8 }
  0xa3   : > { %v1111_v38 = vmul.f32 %v1663_v23, %v2069_v24  ;;  %v1112_v39 = vmul.f32 %v1663_v23, %v2072_v25  ;;  %v1113_v44 = vmul.f32 %v1664_v29, %v2069_v24  ;;  %v1114_v57 = vmul.f32 %v1664_v29, %v2072_v25 }
  0xa4   : > { %v1656_v11 = vpop.permute.xlu0 %1655 }
  0xa5   : > { %v2066_v21 = vpop.permute.xlu1 %1666  ;;  %v1657_v40 = vunpack.i.l.bf16 %v1656_v11  ;;  %v1658_v49 = vunpack.i.h.bf16 %v1656_v11 }
  0xa6   : > { %v1668_v53 = vunpack.i.l.bf16 %v2066_v21  ;;  %v1669_v1 = vunpack.i.h.bf16 %v2066_v21 }
  0xa7   : > { %v953_v58 = vmul.f32 %v1657_v40, %v944_v2  ;;  %v954_v11 = vmul.f32 %v1657_v40, %v948_v8  ;;  %v955_v13 = vmul.f32 %v1658_v49, %v944_v2 }
  0xa9   : > { %v1134_v30 = vpop.permute.xlu0 %1133  ;;  %v1139_v45 = vpop.permute.xlu1 %1138 }
  0xad   : > { %v1144_v54 = vpop.permute.xlu0 %1143 }
  0xb1   : > { %v1174_v2 = vpop.permute.xlu0 %1173 }
  0xeb   : > { %v797_v59 = vpop.f32.mrf.mxu0  ;;  %v807_v60 = vpop.f32.mrf.mxu1 }
  0xed   : > { %v799_v63 = vpop.f32.mrf.mxu0  ;;  %v2057_v0 = vpop.f32.mrf.mxu1 }
  0xef   : > { %v801_v5 = vpop.f32.mrf.mxu0  ;;  %v2060_v6 = vpop.f32.mrf.mxu1 }
  0xf1   : > { %v803_v14 = vpop.f32.mrf.mxu0  ;;  %v2064_v15 = vpop.f32.mrf.mxu1 }
  0xf3   : > { %v881_v18 = vpop.f32.mrf.mxu1  ;;  %v1035_v19 = vpop.f32.mrf.mxu0 }
  0xf4   : > { %v882_v22 = vadd.f32 %v881_v18, %v797_v59  ;;  %v956_v18 = vmul.f32 %v1658_v49, %v948_v8 }
  0xf5   : > { %v883_v26 = vpop.f32.mrf.mxu1  ;;  %v1037_v27 = vpop.f32.mrf.mxu0 }
  0xf6   : > { %v957_v31 = vadd.f32 %v949_v17, %v882_v22  ;;  %v884_v32 = vadd.f32 %v883_v26, %v799_v63 }
  0xf7   : > { %v885_v33 = vpop.f32.mrf.mxu1  ;;  %v1039_v34 = vpop.f32.mrf.mxu0 }
  0xf8   : > { %v958_v36 = vadd.f32 %v950_v20, %v884_v32  ;;  %v886_v37 = vadd.f32 %v885_v33, %v801_v5  ;;  %v1054_v41 = vadd.f32 %v1035_v19, %v957_v31  ;;  %v1115_v19 = vmul.f32 %v1668_v53, %v2069_v24  ;;  %v1149_v20 = vpop.permute.xlu1 %1148 }
  0xf9   : > { %v887_v42 = vpop.f32.mrf.mxu1  ;;  %v1041_v43 = vpop.f32.mrf.mxu0  ;;  %v1116_v31 = vmul.f32 %v1668_v53, %v2072_v25 }
  0xfa   : > { %v1055_v46 = vadd.f32 %v1037_v27, %v958_v36  ;;  %v959_v47 = vadd.f32 %v951_v28, %v886_v37  ;;  %v888_v48 = vadd.f32 %v887_v42, %v803_v14  ;;  %v1119_v59 = vadd.f32 %v1111_v38, %v1054_v41 }
  0xfb   : > { %v891_v50 = vpop.f32.mrf.mxu1  ;;  %v1045_v52 = vpop.f32.mrf.mxu0  ;;  %v1117_v37 = vmul.f32 %v1669_v1, %v2069_v24 }
  0xfc   : > { %v1056_v55 = vadd.f32 %v1039_v34, %v959_v47  ;;  %v960_v56 = vadd.f32 %v952_v35, %v888_v48  ;;  %v892_v61 = vadd.f32 %v891_v50, %v807_v60  ;;  %v1120_v4 = vadd.f32 %v1112_v39, %v1055_v46  ;;  %v1184_v50 = vpop.permute.xlu0 %1183 }
  0xfd   : > { %v893_v62 = vpop.f32.mrf.mxu1  ;;  %v1047_v63 = vpop.f32.mrf.mxu0  ;;  %v1151_v60 = vadd.f32 %v1134_v30, %v1119_v59 }
  0xfe   : > { %v1121_v5 = vadd.f32 %v1113_v44, %v1056_v55  ;;  %v1057_v12 = vadd.f32 %v1041_v43, %v960_v56  ;;  %v961_v14 = vadd.f32 %v953_v58, %v892_v61  ;;  %v894_v16 = vadd.f32 %v893_v62, %v2057_v0 }
  0xff   : > { %v895_v17 = vpop.f32.mrf.mxu1  ;;  %v1049_v28 = vpop.f32.mrf.mxu0  ;;  %v1152_v32 = vadd.f32 %v1134_v30, %v1120_v4  ;;  %v1159_v40 = vmax.f32 %v1151_v60, 0.0  ;;  %v1118_v44 = vmul.f32 %v1669_v1, %v2072_v25 }
 0x100   : > { %v1153_v22 = vadd.f32 %v1139_v45, %v1121_v5  ;;  %v1122_v23 = vadd.f32 %v1114_v57, %v1057_v12  ;;  %v1058_v26 = vadd.f32 %v1045_v52, %v961_v14  ;;  %v962_v27 = vadd.f32 %v954_v11, %v894_v16  ;;  %v1179_v30 = vpop.permute.xlu1 %1178 }
 0x101   : > { %v896_v21 = vadd.f32 %v895_v17, %v2060_v6  ;;  %v897_v29 = vpop.f32.mrf.mxu1  ;;  %v1051_v43 = vpop.f32.mrf.mxu0  ;;  %v1160_v46 = vmax.f32 %v1152_v32, 0.0  ;;  %v1191_v24 = vmul.f32 %v1174_v2, %v1159_v40 }
 0x102   : > { %v1154_v33 = vadd.f32 %v1139_v45, %v1122_v23  ;;  %v898_v0 = vadd.f32 %v897_v29, %v2064_v15  ;;  %v1161_v8 = vmax.f32 %v1153_v22, 0.0  ;;  %v1123_v34 = vadd.f32 %v1115_v19, %v1058_v26 }
 0x103   : > { %v1059_v35 = vadd.f32 %v1047_v63, %v962_v27  ;;  %v963_v36 = vadd.f32 %v955_v13, %v896_v21  ;;  %v1192_v58 = vmul.f32 %v1174_v2, %v1160_v46  ;;  %v1218_v27 = vstv %s1217_s30  ;;  %s1796_s30 = smov [#allocation3]  }
 0x104   : > { %v1162_v38 = vmax.f32 %v1154_v33, 0.0  ;;  %v964_v39 = vadd.f32 %v956_v18, %v898_v0  ;;  %v1155_v41 = vadd.f32 %v1144_v54, %v1123_v34  ;;  %v1193_v47 = vmul.f32 %v1179_v30, %v1161_v8  ;;  %v1189_v1 = vpop.permute.xlu1 %1188  ;;  %s1688_s13 = sshll.u32 %s1796_s30, 4  ;;  %s1689_s13 = int_to_ptr.vmem [resolvable:$false] %s1688_s13 }
 0x105   : > { %v1124_v6 = vadd.f32 %v1116_v31, %v1059_v35  ;;  %v1060_v42 = vadd.f32 %v1049_v28, %v963_v36  ;;  %v1795_v36 = vmov 1966171168   ;;  %s1690_s1 = scalar_lea.vmem %s1689_s13, 64  ;;  %p1691_p1 = scmp.lt.s32.totalorder %s2103_s28, %s1689_s13 }
 0x106   : > { %v1061_v45 = vadd.f32 %v1051_v43, %v964_v39  ;;  %v1163_v15 = vmax.f32 %v1155_v41, 0.0  ;;  %v1194_v52 = vmul.f32 %v1179_v30, %v1162_v38  ;;  %v1199_v61 = vadd.f32 %v1193_v47, %v1191_v24  ;;  %p1692_p2 = scmp.lt.s32.totalorder %s1690_s1, %s1684_s24 }
 0x107   : > { %v1156_v48 = vadd.f32 %v1144_v54, %v1124_v6  ;;  %v1125_v49 = vadd.f32 %v1117_v37, %v1060_v42  ;;  %v1237_v37 = vunpack.c.l.s4 %v1795_v36  ;;  %v1264_v38 = vsub.s32 1, %v1939_v3 }
 0x108   : > { %v1126_v53 = vadd.f32 %v1118_v44, %v1061_v45  ;;  %v1195_v55 = vmul.f32 %v1184_v50, %v1163_v15  ;;  %v1208_v25 = vadd.f32 %v1194_v52, %v1192_v58  ;;  %p1693_p3 = por %p1692_p2, %p1691_p1 }
 0x109   : > { %v1164_v56 = vmax.f32 %v1156_v48, 0.0  ;;  %v1157_v57 = vadd.f32 %v1149_v20, %v1125_v49  ;;  %v1238_v39 = vunpack.c.0.s8 %v1237_v37  ;;  %v1265_v40 = vrot.slane %v1957_v9, %v1264_v38 }
 0x10a   : > { %v1158_v59 = vadd.f32 %v1149_v20, %v1126_v53  ;;  %v1200_v5 = vadd.f32 %v1199_v61, %v1195_v55  ;;  %p1694_p5 = pnand %p1693_p3, %p1687_p0 }
 0x10b   : > { %v1196_v62 = vmul.f32 %v1184_v50, %v1164_v56  ;;  %v1165_v63 = vmax.f32 %v1157_v57, 0.0  ;;  %v1241_v6 = vsub.s32 %v1238_v39, %v1939_v3 }
 0x10c   : > { %v1166_v4 = vmax.f32 %v1158_v59, 0.0 }
 0x10d   : > { %v1197_v12 = vmul.f32 %v1189_v1, %v1165_v63  ;;  %v1209_v11 = vadd.f32 %v1208_v25, %v1196_v62 }
 0x10e   : > { %v1198_v54 = vmul.f32 %v1189_v1, %v1166_v4 }
 0x10f   : > { %v1201_v13 = vadd.f32 %v1200_v5, %v1197_v12 }
 0x110   : > { %v1210_v14 = vadd.f32 %v1209_v11, %v1198_v54 }
 0x111   : > { %v1202_v16 = vrot.slane %v1201_v13, 4 }
 0x112   : > { %v1211_v17 = vrot.slane %v1210_v14, 4 }
 0x113   : > { %v1203_v18 = vadd.f32 %v1202_v16, %v1201_v13 }
 0x114   : > { %v1212_v19 = vadd.f32 %v1211_v17, %v1210_v14 }
 0x115   : > { %v1204_v22 = vrot.slane %v1203_v18, 2 }
 0x116   : > { %v1213_v23 = vrot.slane %v1212_v19, 2 }
 0x117   : > { %v1205_v20 = vadd.f32 %v1204_v22, %v1203_v18 }
 0x118   : > { %v1214_v60 = vadd.f32 %v1213_v23, %v1212_v19 }
 0x119   : > { %v1206_v26 = vrot.slane %v1205_v20, 1 }
 0x11a   : > { %v1215_v21 = vrot.slane %v1214_v60, 1 }
 0x11b   : > { %v1207_v28 = vadd.f32 %v1206_v26, %v1205_v20 }
 0x11c   : > { %v1216_v29 = vadd.f32 %v1215_v21, %v1214_v60 }
 0x11d   : > { %v1219_v31 = vadd.f32 %v1218_v27, %v1207_v28 }
 0x11e   : > { %v1220_v2 = vadd.f32 %v1218_v27, %v1216_v29 }
 0x11f   : > { %v1549_v32 = vmul.f32 -1.442695, %v1219_v31 }
 0x120   : > { %v1550_v33 = vmul.f32 -1.442695, %v1220_v2 }
 0x121   : > { %1676 = vpow2.f32 %v1549_v32 }
 0x122   : > { %1678 = vpow2.f32 %v1550_v33 }
 0x12e   : > { %v1677_v0 = vpop.eup %1676 }
 0x12f   : > { %v1679_v8 = vpop.eup %1678  ;;  %v1227_v34 = vadd.f32 1.0, %v1677_v0 }
 0x130   : > { %v1228_v35 = vadd.f32 1.0, %v1679_v8 }
 0x131   : > { %1680 = vrcp.f32 %v1227_v34 }
 0x132   : > { %1682 = vrcp.f32 %v1228_v35 }
 0x13e   : > { %v1681_v41 = vpop.eup %1680 }
 0x13f   : > { %v1683_v42 = vpop.eup %1682  ;;  %v1268_v43 = vsub.f32 %v1681_v41, %v1261_v10 }
 0x140   : > { %v1235_v44 = vcombine.low %v1681_v41, %v1683_v42  ;;  %v1269_v46 = vsub.f32 %v1683_v42, %v1265_v40 }
 0x141   : > { %v1270_v45 = vmul.f32 %v1268_v43, %v1268_v43 }
 0x142   : > { %v1242_v30 = vrot.slane %v1235_v44, %v1241_v6  ;;  %v1271_v47 = vmul.f32 %v1269_v46, %v1269_v46 }
 0x144   : > { %v1249_v15 = vrot.slane %v1242_v30, %v1241_v6  ;;  %v1275_v3 = vcombine.low %v1270_v45, %v1271_v47 }
 0x146   : > { %1255 = vst.msk [vmem:[%s641_s22] sm:$0x3] %vm2035_vm3, %v1249_v15  ;;  %v1282_v7 = vrot.slane %v1275_v3, %v1241_v6 }
 0x147   : > { %1697 = shalt.err (!%p1694_p5)
}
 0x148   : > { %s1698_s22 = scalar_lea.hbm %s2101_s26, 32  ;;  %s1702_s30 = scalar_lea.hbm %s2189_s14, 64 }
 0x149   : > { %p1699_p6 = scmp.ne.s32.totalorder %s2101_s26, %s1698_s22  ;;  %p1703_p10 = scmp.lt.s32.totalorder %s2101_s26, %s2189_s14 }
 0x14a   : > { %p1704_p11 = scmp.lt.s32.totalorder %s1702_s30, %s1698_s22 }
 0x14b   : > { %p1700_p7 = pnand %p1699_p6, %p1921_p4 }
 0x14c   : > { %p1705_p12 = por %p1704_p11, %p1703_p10 }
 0x14d   : > { %p1701_p9 = pneg %p1700_p7 }
 0x14f   : > { %p1706_p13 = pnand %p1705_p12, %p1701_p9 }
 0x151   : > { %1709 = shalt.err (!%p1706_p13)
}
 0x152   : > { %1584 = dma.vmem_to_hbm [thread:$0]  (%p1921_p4), %s2103_s28, 32, %s2101_s26, %s1294_s18   ;;  %v1272_v9 = vld [vmem:[%s2042_s19] sm:$0x3]  ;;  %v1289_v10 = vrot.slane %v1282_v7, %v1241_v6 }
 0x153   : > { %s2211_s0 = sshll.u32 %s1782_s23, 5  ;;  %s2212_s24 = sshll.u32 %s2042_s19, 4  ;;  %s1330_s24 = int_to_ptr.vmem [resolvable:$true] %s2212_s24 }
 0x154   : > { %v1291_v48 = vadd.f32 %v1289_v10, %v1272_v9  ;;  %s1327_s17 = scalar_lea.hbm %s2190_s15, %s2211_s0  ;;  %s1299_s13 = scalar_lea.sflag [#allocation6], %s2032_s16 }
 0x155   : > { %s1710_s1 = scalar_lea.vmem %s1330_s24, 32  ;;  %s1797_s28 = smov [#allocation5]  }
 0x156   : > { %1292 = vst.msk [vmem:[%s2042_s19] sm:$0x3] %vm2035_vm3, %v1291_v48  ;;  %p1711_p0 = scmp.ne.s32.totalorder %s1330_s24, %s1710_s1  ;;  %s1714_s26 = sshll.u32 %s1797_s28, 4  ;;  %s1715_s26 = int_to_ptr.vmem [resolvable:$false] %s1714_s26 }
 0x157   : > { %s1716_s18 = scalar_lea.vmem %s1715_s26, 64  ;;  %p1717_p3 = scmp.lt.s32.totalorder %s1330_s24, %s1715_s26 }
 0x158   : > { %p1712_p1 = pnand %p1711_p0, %p1921_p4  ;;  %p1718_p5 = scmp.lt.s32.totalorder %s1716_s18, %s1710_s1 }
 0x15a   : > { %p1713_p2 = pneg %p1712_p1  ;;  %p1719_p6 = por %p1718_p5, %p1717_p3 }
 0x15c   : > { %p1720_p7 = pnand %p1719_p6, %p1713_p2 }
 0x15e   : > { %1723 = shalt.err (!%p1720_p7)
}
 0x15f   : > { %s1724_s23 = scalar_lea.hbm %s1327_s17, 32  ;;  %s1728_s22 = scalar_lea.hbm %s2190_s15, 64 }
 0x160   : > { %p1725_p9 = scmp.ne.s32.totalorder %s1327_s17, %s1724_s23  ;;  %p1729_p12 = scmp.lt.s32.totalorder %s1327_s17, %s2190_s15 }
 0x161   : > { %p1730_p13 = scmp.lt.s32.totalorder %s1728_s22, %s1724_s23 }
 0x162   : > { %p1726_p10 = pnand %p1725_p9, %p1921_p4 }
 0x163   : > { %p1731_p0 = por %p1730_p13, %p1729_p12 }
 0x164   : > { %p1727_p11 = pneg %p1726_p10 }
 0x166   : > { %p1732_p1 = pnand %p1731_p0, %p1727_p11 }
 0x168   : > { %1735 = shalt.err (!%p1732_p1)
}
 0x169   : > { %1585 = dma.vmem_to_hbm [thread:$0]  (%p1921_p4), %s1330_s24, 32, %s1327_s17, %s1299_s13  }
 0x16a PF: > { %p1595_p2 = scmp.ge.s32.totalorder %s1790_s25, 2  ;;  %s1341_s27 = sand.u32 1, %s1770_s20  }
 0x16b   : > { %s1342_s1 = scalar_lea.sflag [#allocation4], %s1341_s27 }
 0x16c   : > { %p1589_p3 = pnand %p1595_p2, %p1928_p8 }
 0x16e   : > { %p1590_p5 = pneg %p1589_p3 }
 0x170   : > { %1761 = dma.done.wait (%p1590_p5), %s1342_s1, 32  }
 0x171   : > { %1763 = vsyncadd (%p1590_p5), %s1342_s1, 4294967264  ;;  %s1351_s28 = scalar_lea.sflag [#allocation6], %s1341_s27 }
 0x172   : > { %1765 = dma.done.wait (%p1590_p5), %s1351_s28, 32  }
 0x173   : > { %1767 = vsyncadd (%p1590_p5), %s1351_s28, 4294967264  ;;  %s33_s25 = sadd.s32 1, %s1790_s25   ;;  %s2214_s29 = sld [smem:[#allocation9_spill]] }
 0x174   : > { %p30_p6 = scmp.ge.s32.totalorder %s33_s25, 4   ;;  %s2215_s22 = sld [smem:[#allocation13_spill]] }
 0x175   : > { %s2216_s23 = sld [smem:[#allocation10_spill]]  ;;  %s2218_s20 = smov %s1774_s21 }
 0x176   : > { %s2217_s24 = sld [smem:[#allocation11_spill]]  ;;  %32 = sbr.rel (!%p30_p6) target bundleno = 11 (0xb), region = 147 }
 0x179   : > { %s2219_s21 = smov %s2214_s29 }
 0x17b   :  { %1356 = vsyncpa [#allocation4], 1 }
 0x17c   :  { %1358 = vsyncpa [#allocation4 + $0x1], 1 }
 0x17d   :  { %1359 = vsyncpa [#allocation6], 1 }
 0x17e   :  { %1361 = vsyncpa [#allocation6 + $0x1], 1 }

</bundles_post_ra>
